<compile_context>
chip_gen: v7x
topology: tpu7x:2x2x1
jax: 0.10.0
libtpu: 0.0.40
codegen_flags: <defaults>
</compile_context>

<pallas_src>
import functools
import math

import jax
import jax.numpy as jnp
import numpy as np
from jax.experimental import pallas as pl
from jax.experimental.pallas import tpu as pltpu


def _cross_attn_kernel(q_ref, x_ref, xT_ref, wq_ref, wkT_ref, wv_ref, o_ref, *,
                       num_heads):
    # q_ref  : (B, n, C)      queries                       (mxu dtype, e.g. bf16)
    # x_ref  : (B, N, C)      context tokens (V projection)
    # xT_ref : (B, C, N)      context tokens transposed (K^T projection)
    # wq_ref : (C, C)         q weight, softmax scale pre-folded
    # wkT_ref: (C, C)         k weight pre-transposed -> (out, in)
    # wv_ref : (C, C)         v weight
    # o_ref  : (B, H, n, hd)  f32/out-dtype slab; host re-interleaves heads
    B, n, C = q_ref.shape
    _, N, _ = x_ref.shape
    H = num_heads
    hd = C // H
    G = B * H

    mxu_dtype = q_ref.dtype  # bf16 by default (f32 if the wrapper was asked for it)

    # ---- Projections: full-width 2-D matmuls, contraction over C on the MXU. ----
    q2d = q_ref[...].reshape(B * n, C)
    x2d = x_ref[...].reshape(B * N, C)
    qp = jnp.dot(q2d, wq_ref[...], preferred_element_type=jnp.float32)  # (B*n, C)
    vp = jnp.dot(x2d, wv_ref[...], preferred_element_type=jnp.float32)  # (B*N, C)

    # K projection emitted already transposed: kpT[b] = wk.T @ x[b].T -> (C, N).
    # Keeps the score matmul below layout-native (no implicit XLU transpose of K).
    wkT = wkT_ref[...]
    kpT = jnp.stack([
        jnp.dot(wkT, xT_ref[b], preferred_element_type=jnp.float32)
        for b in range(B)
    ])                                                                   # (B, C, N)

    # ---- Head-grouped views for the attention part (g = b*H + h). ----
    qp_g = (qp.astype(mxu_dtype)
            .reshape(B, n, H, hd).transpose(0, 2, 1, 3).reshape(G, n, hd))
    vp_g = (vp.astype(mxu_dtype)
            .reshape(B, N, H, hd).transpose(0, 2, 1, 3).reshape(G, N, hd))
    kpT_g = kpT.astype(mxu_dtype).reshape(G, hd, N)   # pure leading-dim split

    # ---- Attention: bf16 MXU operands, f32 accumulation, f32 softmax. ----
    # Scale is already folded into wq.  Both einsums are layout-native batched
    # matmuls (contraction on lhs minor / rhs second-minor dims).
    s = jnp.einsum('gqd,gdm->gqm', qp_g, kpT_g,
                   preferred_element_type=jnp.float32)                   # (G, n, N)
    s = s - jnp.max(s, axis=-1, keepdims=True)
    p = jnp.exp(s)
    p = p * pl.reciprocal(jnp.sum(p, axis=-1, keepdims=True), approx=True)
    og = jnp.einsum('gqm,gmd->gqd', p.astype(mxu_dtype), vp_g,
                    preferred_element_type=jnp.float32)                  # (G, n, hd)

    # Contiguous (B, H, n, hd) slab; head re-interleave happens on the host.
    o_ref[...] = og.reshape(B, H, n, hd).astype(o_ref.dtype)


def cross_attention(q, x, wq, wkv, *, num_heads, mxu_dtype=jnp.bfloat16):
    B, n, C = q.shape
    _, N, _ = x.shape
    assert C % num_heads == 0
    hd = C // num_heads
    scale = hd ** (-0.5)

    # Host-side (one-time) weight / layout plumbing:
    #   - split the fused kv weight into k / v halves,
    #   - fold the softmax scale into the q weight,
    #   - pre-transpose wk and x so the in-kernel K projection is emitted as K^T,
    #   - cast MXU operands to bf16 (accumulation / softmax stay f32 in-kernel).
    wq_s = (wq * scale).astype(mxu_dtype)              # (C, C)
    wkT = wkv[:, :C].T.astype(mxu_dtype)               # (C_out, C_in)
    wv = wkv[:, C:].astype(mxu_dtype)                  # (C, C)

    q_lp = q.astype(mxu_dtype)                         # (B, n, C)
    x_lp = x.astype(mxu_dtype)                         # (B, N, C)
    xT_lp = x_lp.transpose(0, 2, 1)                    # (B, C, N)

    kernel = functools.partial(_cross_attn_kernel, num_heads=num_heads)

    # Single gridless invocation: the whole problem is resident in VMEM; a grid's
    # per-step pipeline overhead would dominate at this size (see TODO above for
    # the production-size restructure).
    out_slab = pl.pallas_call(
        kernel,
        out_shape=jax.ShapeDtypeStruct((B, num_heads, n, hd), q.dtype),
        in_specs=[pl.BlockSpec(memory_space=pltpu.MemorySpace.VMEM)] * 6,
        out_specs=pl.BlockSpec(memory_space=pltpu.MemorySpace.VMEM),
    )(q_lp, x_lp, xT_lp, wq_s, wkT, wv)

    # Head re-interleave (== transpose(1,2).reshape in the PyTorch module) is pure
    # layout plumbing; keep it outside the kernel.
    return out_slab.transpose(0, 2, 1, 3).reshape(B, n, C)


def _reference(q, x, wq, wkv, *, num_heads):
    B, n, C = q.shape
    _, N, _ = x.shape
    hd = C // num_heads
    scale = hd ** (-0.5)

    qp = (q @ wq).reshape(B, n, num_heads, hd).transpose(0, 2, 1, 3)        # (B,H,n,hd)
    kvp = (x @ wkv).reshape(B, N, 2, num_heads, hd).transpose(2, 0, 3, 1, 4)
    k, v = kvp[0], kvp[1]                                                   # (B,H,N,hd)
    attn = jax.nn.softmax(jnp.einsum("bhnd,bhmd->bhnm", qp, k) * scale, axis=-1)
    out = jnp.einsum("bhnm,bhmd->bhnd", attn, v)                            # (B,H,n,hd)
    return out.transpose(0, 2, 1, 3).reshape(B, n, C)


if __name__ == "__main__":
    B, n, N, dim, num_heads = 2, 8, 16, 32, 4

    key = jax.random.PRNGKey(0)
    kq, kx, kwq, kwkv, kwp, kbp = jax.random.split(key, 6)

    q_in = jax.random.normal(kq, (B, n, dim), dtype=jnp.float32)
    x_in = jax.random.normal(kx, (B, N, dim), dtype=jnp.float32)

    # Deterministic "Linear" parameter init (stored as (in, out)).
    bound = 1.0 / math.sqrt(dim)
    wq = jax.random.uniform(kwq, (dim, dim), jnp.float32, -bound, bound)
    wkv = jax.random.uniform(kwkv, (dim, 2 * dim), jnp.float32, -bound, bound)
    # proj params exist in __init__ but are never used by forward(); kept for parity.
    w_proj = jax.random.uniform(kwp, (dim, dim), jnp.float32, -bound, bound)
    b_proj = jax.random.uniform(kbp, (dim,), jnp.float32, -bound, bound)
    del w_proj, b_proj  # unused in forward, matching the PyTorch module

    out = cross_attention(q_in, x_in, wq, wkv, num_heads=num_heads)
    out = jax.block_until_ready(out)

    ref = _reference(q_in, x_in, wq, wkv, num_heads=num_heads)
    # Tolerance sized for bf16 MXU operands (+ approx reciprocal) vs. a pure-f32
    # reference; softmax/accumulation are f32 inside the kernel.
    np.testing.assert_allclose(np.asarray(out), np.asarray(ref), rtol=2e-2, atol=2e-2)

    print("KERNEL_OK")
</pallas_src>

<mosaic_0001>
module attributes {stable_mosaic.version = 11 : i64} {
  func.func @_cross_attn_kernel(%arg0: memref<2x8x32xbf16, #tpu.memory_space<vmem>>, %arg1: memref<2x16x32xbf16, #tpu.memory_space<vmem>>, %arg2: memref<2x32x16xbf16, #tpu.memory_space<vmem>>, %arg3: memref<32x32xbf16, #tpu.memory_space<vmem>>, %arg4: memref<32x32xbf16, #tpu.memory_space<vmem>>, %arg5: memref<32x32xbf16, #tpu.memory_space<vmem>>, %arg6: memref<2x4x8x8xf32, #tpu.memory_space<vmem>>) attributes {dimension_semantics = [], scalar_prefetch = 0 : i64, scratch_operands = 0 : i64, tpu.core_type = #tpu.core_type<tc>} {
    %c0 = arith.constant 0 : index
    %c0_0 = arith.constant 0 : index
    %c0_1 = arith.constant 0 : index
    %0 = vector.load %arg0[%c0, %c0_0, %c0_1] : memref<2x8x32xbf16, #tpu.memory_space<vmem>>, vector<2x8x32xbf16>
    %1 = vector.shape_cast %0 : vector<2x8x32xbf16> to vector<16x32xbf16>
    %c0_2 = arith.constant 0 : index
    %c0_3 = arith.constant 0 : index
    %c0_4 = arith.constant 0 : index
    %2 = vector.load %arg1[%c0_2, %c0_3, %c0_4] : memref<2x16x32xbf16, #tpu.memory_space<vmem>>, vector<2x16x32xbf16>
    %3 = vector.shape_cast %2 : vector<2x16x32xbf16> to vector<32x32xbf16>
    %c0_5 = arith.constant 0 : index
    %c0_6 = arith.constant 0 : index
    %4 = vector.load %arg3[%c0_5, %c0_6] : memref<32x32xbf16, #tpu.memory_space<vmem>>, vector<32x32xbf16>
    %cst = arith.constant dense<0.000000e+00> : vector<16x32xf32>
    %5 = tpu.matmul %1, %4, %cst {dimension_numbers = #tpu.dot_dimension_numbers<[1], [0], [0], [1], [0, 0, 1, 1], [], []>} : vector<16x32xbf16>, vector<32x32xbf16>, vector<16x32xf32> -> vector<16x32xf32>
    %c0_7 = arith.constant 0 : index
    %c0_8 = arith.constant 0 : index
    %6 = vector.load %arg5[%c0_7, %c0_8] : memref<32x32xbf16, #tpu.memory_space<vmem>>, vector<32x32xbf16>
    %cst_9 = arith.constant dense<0.000000e+00> : vector<32x32xf32>
    %7 = tpu.matmul %3, %6, %cst_9 {dimension_numbers = #tpu.dot_dimension_numbers<[1], [0], [0], [1], [0, 0, 1, 1], [], []>} : vector<32x32xbf16>, vector<32x32xbf16>, vector<32x32xf32> -> vector<32x32xf32>
    %c0_10 = arith.constant 0 : index
    %c0_11 = arith.constant 0 : index
    %8 = vector.load %arg4[%c0_10, %c0_11] : memref<32x32xbf16, #tpu.memory_space<vmem>>, vector<32x32xbf16>
    %c0_12 = arith.constant 0 : index
    %c0_13 = arith.constant 0 : index
    %c0_14 = arith.constant 0 : index
    %9 = vector.load %arg2[%c0_12, %c0_13, %c0_14] : memref<2x32x16xbf16, #tpu.memory_space<vmem>>, vector<1x32x16xbf16>
    %10 = vector.shape_cast %9 : vector<1x32x16xbf16> to vector<32x16xbf16>
    %cst_15 = arith.constant dense<0.000000e+00> : vector<32x16xf32>
    %11 = tpu.matmul %8, %10, %cst_15 {dimension_numbers = #tpu.dot_dimension_numbers<[1], [0], [0], [1], [0, 0, 1, 1], [], []>} : vector<32x32xbf16>, vector<32x16xbf16>, vector<32x16xf32> -> vector<32x16xf32>
    %c1 = arith.constant 1 : index
    %c0_16 = arith.constant 0 : index
    %c0_17 = arith.constant 0 : index
    %12 = vector.load %arg2[%c1, %c0_16, %c0_17] : memref<2x32x16xbf16, #tpu.memory_space<vmem>>, vector<1x32x16xbf16>
    %13 = vector.shape_cast %12 : vector<1x32x16xbf16> to vector<32x16xbf16>
    %cst_18 = arith.constant dense<0.000000e+00> : vector<32x16xf32>
    %14 = tpu.matmul %8, %13, %cst_18 {dimension_numbers = #tpu.dot_dimension_numbers<[1], [0], [0], [1], [0, 0, 1, 1], [], []>} : vector<32x32xbf16>, vector<32x16xbf16>, vector<32x16xf32> -> vector<32x16xf32>
    %15 = vector.shape_cast %11 : vector<32x16xf32> to vector<1x32x16xf32>
    %16 = vector.shape_cast %14 : vector<32x16xf32> to vector<1x32x16xf32>
    %17 = tpu.concatenate %15, %16 in 0 : vector<1x32x16xf32>, vector<1x32x16xf32> -> vector<2x32x16xf32>
    %18 = arith.truncf %5 : vector<16x32xf32> to vector<16x32xbf16>
    %19 = vector.shape_cast %18 : vector<16x32xbf16> to vector<2x8x4x8xbf16>
    %20 = tpu.transpose %19, [0, 2, 1, 3] : vector<2x8x4x8xbf16> -> vector<2x4x8x8xbf16>
    %21 = vector.shape_cast %20 : vector<2x4x8x8xbf16> to vector<8x8x8xbf16>
    %22 = arith.truncf %7 : vector<32x32xf32> to vector<32x32xbf16>
    %23 = vector.shape_cast %22 : vector<32x32xbf16> to vector<2x16x4x8xbf16>
    %24 = tpu.transpose %23, [0, 2, 1, 3] : vector<2x16x4x8xbf16> -> vector<2x4x16x8xbf16>
    %25 = vector.shape_cast %24 : vector<2x4x16x8xbf16> to vector<8x16x8xbf16>
    %26 = arith.truncf %17 : vector<2x32x16xf32> to vector<2x32x16xbf16>
    %27 = vector.shape_cast %26 : vector<2x32x16xbf16> to vector<8x8x16xbf16>
    "tpu.trace_start"() <{level = 10 : i32, message = "gqd,gdm->gqm"}> : () -> ()
    %cst_19 = arith.constant dense<0.000000e+00> : vector<8x8x16xf32>
    %28 = tpu.matmul %21, %27, %cst_19 {dimension_numbers = #tpu.dot_dimension_numbers<[2], [1], [1], [2], [0, 0, 0, 1, 1, 2], [0], [0]>} : vector<8x8x8xbf16>, vector<8x8x16xbf16>, vector<8x8x16xf32> -> vector<8x8x16xf32>
    "tpu.trace_stop"() : () -> ()
    %cst_20 = arith.constant dense<0xFF800000> : vector<8x8xf32>
    %29 = vector.multi_reduction <maximumf>, %28, %cst_20 [2] : vector<8x8x16xf32> to vector<8x8xf32>
    %30 = vector.shape_cast %29 : vector<8x8xf32> to vector<8x8x1xf32>
    %31 = vector.broadcast %30 : vector<8x8x1xf32> to vector<8x8x16xf32>
    %32 = arith.subf %28, %31 : vector<8x8x16xf32>
    %33 = math.exp %32 : vector<8x8x16xf32>
    %cst_21 = arith.constant dense<0.000000e+00> : vector<8x8xf32>
    %34 = vector.multi_reduction <add>, %33, %cst_21 [2] : vector<8x8x16xf32> to vector<8x8xf32>
    %35 = vector.shape_cast %34 : vector<8x8xf32> to vector<8x8x1xf32>
    %36 = tpu.reciprocal %35 {approx = true} : vector<8x8x1xf32> -> vector<8x8x1xf32>
    %37 = vector.broadcast %36 : vector<8x8x1xf32> to vector<8x8x16xf32>
    %38 = arith.mulf %33, %37 : vector<8x8x16xf32>
    %39 = arith.truncf %38 : vector<8x8x16xf32> to vector<8x8x16xbf16>
    "tpu.trace_start"() <{level = 10 : i32, message = "gqm,gmd->gqd"}> : () -> ()
    %cst_22 = arith.constant dense<0.000000e+00> : vector<8x8x8xf32>
    %40 = tpu.matmul %39, %25, %cst_22 {dimension_numbers = #tpu.dot_dimension_numbers<[2], [1], [1], [2], [0, 0, 0, 1, 1, 2], [0], [0]>} : vector<8x8x16xbf16>, vector<8x16x8xbf16>, vector<8x8x8xf32> -> vector<8x8x8xf32>
    "tpu.trace_stop"() : () -> ()
    %41 = vector.shape_cast %40 : vector<8x8x8xf32> to vector<2x4x8x8xf32>
    %c0_23 = arith.constant 0 : index
    %c0_24 = arith.constant 0 : index
    %c0_25 = arith.constant 0 : index
    %c0_26 = arith.constant 0 : index
    %42 = vector.load %arg6[%c0_23, %c0_24, %c0_25, %c0_26] : memref<2x4x8x8xf32, #tpu.memory_space<vmem>>, vector<2x4x8x8xf32>
    tpu.vector_store %arg6[%c0_23, %c0_24, %c0_25, %c0_26], %41 {strides = array<i32>} : memref<2x4x8x8xf32, #tpu.memory_space<vmem>>, vector<2x4x8x8xf32>,
    return
  }
}

</mosaic_0001>

<bundles_post_ra>
// kernel: tpu_custom_call.1
= control target key start
LH: loop header
LB: loop body
LE: loop exit
PB: predicated region body
PF: predicated region fallthrough
CT: control target
= control target key end

     0   :  { %11 = vsyncpa [#allocation3], 0  ;;  %s2816_s0 = inlined_call_operand.hbm [shape: bf16[2,8,32], index: 0, kind: input, shape index: {}]   ;;  %s2817_s1 = inlined_call_operand.vmem [shape: bf16[2,16,32], index: 1, kind: input, shape index: {}]   ;;  %s2818_s2 = inlined_call_operand.vmem [shape: bf16[2,32,16], index: 2, kind: input, shape index: {}]   ;;  %s2819_s3 = inlined_call_operand.vmem [shape: bf16[32,32], index: 3, kind: input, shape index: {}]   ;;  %s2820_s4 = inlined_call_operand.vmem [shape: bf16[32,32], index: 4, kind: input, shape index: {}]   ;;  %s2821_s5 = inlined_call_operand.vmem [shape: bf16[32,32], index: 5, kind: input, shape index: {}]   ;;  %s2822_s6 = inlined_call_operand.hbm [shape: f32[2,4,8,8], index: 6, kind: output, shape index: {}]  }
   0x1   :  { %12 = vsyncpa [#allocation4], 0  ;;  %s2383_s21 = smov [#allocation2]   ;;  %s2335_s25 = scalar_lea.hbm %s2816_s0, 128 }
   0x2   :  { %s18_s22 = sshll.u32 %s2383_s21, 4  ;;  %p2336_p0 = scmp.ne.s32.totalorder %s2816_s0, %s2335_s25  ;;  %s19_s22 = int_to_ptr.vmem [resolvable:$true] %s18_s22 }
   0x3   :  { %p2339_p1 = scmp.lt.u32.totalorder %s2335_s25, %s2816_s0 }
   0x5   :  { %p2341_p2 = pnand %p2339_p1, %p2336_p0 }
   0x7   :  { %2344 = shalt.err (!%p2341_p2)
}
   0x8   :  { %s2345_s30 = scalar_lea.vmem %s19_s22, 128  ;;  %p2350_p4 = scmp.lt.s32.totalorder %s19_s22, %s19_s22 }
   0x9   :  { %p2346_p3 = scmp.ne.s32.totalorder %s19_s22, %s2345_s30  ;;  %p2351_p5 = scmp.lt.s32.totalorder %s2345_s30, %s2345_s30 }
   0xb   :  { %p2352_p6 = por %p2351_p5, %p2350_p4 }
   0xd   :  { %p2353_p7 = pnand %p2352_p6, %p2346_p3 }
   0xf   :  { %2356 = shalt.err (!%p2353_p7)
}
  0x10   :  { %s2384_s7 = smov 64   ;;  %s2385_s8 = smov 4  }
  0x11   :  { %24 = dma.hbm_to_vmem [thread:$0]  %s2816_s0, 128, %s19_s22, [#allocation3], %s2384_s7, %s2384_s7, %s2385_s8  }
  0x12   :  { %2379 = dma.done.wait [#allocation3], 128  }
  0x13   :  { %2380 = vsyncadd [#allocation3], 4294967168  ;;  %v2386_v0 = vmov 0.0   ;;  %vm2387_vm0 = vmmov 0   ;;  %v2290_v1 = vld [vmem:[%s2819_s3] sm:$0xff]   ;;  %v2291_v2 = vld [vmem:[%s2819_s3 + $0x8] sm:$0xff]   ;;  %v377_v51 = vlaneseq }
  0x14   :  { %2148 = vmatprep.subr.bf16.mxu0 %v2386_v0  ;;  %2152 = vmatprep.mubr.msk.bf16.mxu0 %vm2387_vm0, %v2386_v0  ;;  %v2293_v3 = vld [vmem:[%s2818_s2] sm:$0xff]   ;;  %vm66_vm1 = vcmask 261120   ;;  %v2294_v7 = vld [vmem:[%s2818_s2 + $0x8] sm:$0xff]   ;;  %v2301_v10 = vld [vmem:[%s2818_s2 + $0x10] sm:$0xff]   ;;  %vm1201_vm2 = vcmask 1043456   ;;  %vm1197_vm3 = vcmask 64512  }
  0x15   :  { %2149 = vmatpush3.bf16.msra.mxu0 %v2290_v1  ;;  %v2292_v4 = vld [vmem:[#allocation2] sm:$0xff]   ;;  %v2298_v8 = vld [vmem:[%s2821_s5 + $0x8] sm:$0xff]   ;;  %v2302_v13 = vld [vmem:[%s2818_s2 + $0x18] sm:$0xff]   ;;  %s2389_s2 = smov 120   ;;  %v2391_v49 = vmov 1983009808  }
  0x16   :  { %2150 = vmatprep.subr.bf16.mxu0 %v2386_v0  ;;  %v2295_v5 = vld [vmem:[%s2820_s4] sm:$0xff]   ;;  %v2300_v11 = vld [vmem:[%s2817_s1 + $0x8] sm:$0xff]   ;;  %v375_v50 = vunpack.c.l.s4 %v2391_v49  ;;  %v378_v53 = vshrl.u32 %v377_v51, 7  ;;  %v2392_v54 = vmov 1934713408   ;;  %vm1567_vm4 = vcmask 130048  }
  0x17   :  { %v2296_v6 = vld [vmem:[%s2821_s5] sm:$0xff]   ;;  %v2297_v12 = vld [vmem:[%s2820_s4 + $0x8] sm:$0xff]   ;;  %s2390_s4 = smov 112   ;;  %v406_v55 = vunpack.c.l.s4 %v2392_v54  ;;  %s2394_s8 = smov [#allocation5]  }
  0x18   :  { %2156 = vmatprep.subr.bf16.mxu1 %v2296_v6  ;;  %v2299_v9 = vld [vmem:[%s2817_s1] sm:$0xff]   ;;  %s2388_s1 = smov 104   ;;  %v376_v52 = vunpack.c.0.s8 %v375_v50  ;;  %s2021_s9 = sshll.u32 %s2394_s8, 4  ;;  %s2022_s9 = int_to_ptr.vmem [resolvable:$true] %s2021_s9 }
  0x19   :  { %2151 = vmatpush3.bf16.msra.mxu0 %v2291_v2  ;;  %2157 = vmatpush3.bf16.msra.mxu1 %v2296_v6  ;;  %v407_v62 = vunpack.c.0.s8 %v406_v55  ;;  %v2393_v2 = vmov 0   ;;  %s2357_s10 = scalar_lea.vmem %s2022_s9, 1024  ;;  %p2362_p9 = scmp.lt.s32.totalorder %s2022_s9, %s2022_s9 }
  0x1a   :  { %2164 = vmatprep.subr.bf16.mxu0 %v2293_v3  ;;  %2158 = vmatprep.subr.bf16.mxu1 %v2298_v8  ;;  %v2526_v60 = vsub.s32 %v376_v52, %v378_v53  ;;  %p2358_p8 = scmp.ne.s32.totalorder %s2022_s9, %s2357_s10  ;;  %p2363_p10 = scmp.lt.s32.totalorder %s2357_s10, %s2357_s10 }
  0x1b   :  { %2160 = vmatprep.mubr.msk.bf16.mxu1 %vm66_vm1, %v2299_v9 }
  0x1c   :  { %2153 = vmatmul.mubr.msk.bf16.vlgmr.msra.gmra.mrb[0].mxu0 %vm66_vm1, %v2292_v4  ;;  %p2364_p11 = por %p2363_p10, %p2362_p9 }
  0x1d   :  { %2165 = vmatpush3.bf16.msra.mxu0 %v2293_v3  ;;  %2168 = vmatprep.mubr.msk.bf16.mxu0 %vm66_vm1, %v2295_v5  ;;  %v2530_v3 = vpack.i.b16 %v2393_v2, %v2393_v2 }
  0x1e   :  { %2166 = vmatprep.subr.bf16.mxu0 %v2294_v7  ;;  %2159 = vmatpush3.bf16.msra.mxu1 %v2298_v8  ;;  %v2533_v8 = vsub.s32 %v407_v62, %v378_v53  ;;  %p2365_p12 = pnand %p2364_p11, %p2358_p8 }
  0x1f   :  { %2172 = vmatprep.subr.bf16.mxu1 %v2301_v10 }
  0x21   :  { %2167 = vmatpush3.bf16.msra.mxu0 %v2294_v7  ;;  %2161 = vmatmul.mubr.msk.bf16.vlgmr.msra.gmra.mrb[0].mxu1 %vm66_vm1, %v2300_v11 }
  0x22   :  { %2180 = vmatprep.subr.bf16.mxu0 %v2386_v0  ;;  %2173 = vmatpush3.bf16.msra.mxu1 %v2301_v10 }
  0x23   :  { %2174 = vmatprep.subr.bf16.mxu1 %v2302_v13  ;;  %2176 = vmatprep.mubr.msk.bf16.mxu1 %vm66_vm1, %v2295_v5 }
  0x24   :  { %2169 = vmatmul.mubr.msk.bf16.vlgmr.msra.gmra.mrb[4].mxu0 %vm66_vm1, %v2297_v12 }
  0x25   :  { %2182 = vmatprep.mubr.msk.bf16.mxu0 %vm2387_vm0, %v2386_v0 }
  0x26   :  { %2175 = vmatpush3.bf16.msra.mxu1 %v2302_v13 }
  0x27   :  { %2186 = vmatprep.subr.bf16.mxu1 %v2386_v0 }
  0x29   :  { %2177 = vmatmul.mubr.msk.bf16.vlgmr.msra.gmra.mrb[4].mxu1 %vm66_vm1, %v2297_v12 }
  0x2a   :  { %2188 = vmatprep.mubr.msk.bf16.mxu1 %vm2387_vm0, %v2386_v0 }
  0xef   :  { %v104_v14 = vpop.f32.mrb[0].mxu0 }
  0xf0   :  { %v2154_v15 = vpop.f32.mrb[1].mxu0 }
  0xf1   :  { %v107_v16 = vpop.f32.mrb[2].mxu0 }
  0xf2   :  { %v343_v17 = vpack.c.bf16 %v107_v16, %v104_v14  ;;  %v2155_v18 = vpop.f32.mrb[3].mxu0 }
  0xf4   :  { %349 = vrot.lane.b32.xlu1 %v343_v17, %s2388_s1  ;;  %345 = vrot.lane.b32.xlu0 %v343_v17, %s2389_s2  ;;  %v2162_v30 = vpop.f32.mrb[0].mxu1  ;;  %v355_v58 = vshrl.u32 %v343_v17, 16 }
  0xf5   :  { %v177_v32 = vpop.f32.mrb[1].mxu1 }
  0xf6   :  { %v2163_v33 = vpop.f32.mrb[2].mxu1 }
  0xf7   :  { %v2170_v19 = vpop.f32.mrb[4].mxu0  ;;  %v2509_v34 = vpack.c.bf16 %v2163_v33, %v2162_v30  ;;  %v180_v35 = vpop.f32.mrb[3].mxu1 }
  0xf8   :  { %347 = vrot.lane.b32.xlu0 %v343_v17, %s2390_s4  ;;  %v262_v20 = vpop.f32.mrb[5].mxu0  ;;  %v2095_v21 = vpack.c.bf16 %v2170_v19, %v2170_v19  ;;  %v2512_v36 = vpack.c.bf16 %v180_v35, %v177_v32 }
  0xf9   :  { %v2093_v22 = vpack.c.bf16 %v262_v20, %v262_v20  ;;  %v2171_v23 = vpop.f32.mrb[6].mxu0 }
  0xfa   :  { %v2096_v24 = vpack.c.bf16 %v2171_v23, %v2171_v23  ;;  %v265_v25 = vpop.f32.mrb[7].mxu0  ;;  %v2501_v26 = vsel %vm1201_vm2, %v2095_v21, 0 }
  0xfb   :  { %v1203_v27 = vsel %vm1201_vm2, %v2093_v22, 0  ;;  %v2094_v28 = vpack.c.bf16 %v265_v25, %v265_v25 }
  0xfc   :  { %v2505_v29 = vsel %vm1201_vm2, %v2096_v24, 0  ;;  %2181 = vmatpush3.bf16.msra.mxu0 %v1203_v27  ;;  %v2178_v37 = vpop.f32.mrb[4].mxu1 }
  0xfd   :  { %v1249_v31 = vsel %vm1201_vm2, %v2094_v28, 0  ;;  %2192 = vmatprep.subr.bf16.mxu0 %v2386_v0  ;;  %v2099_v38 = vpack.c.bf16 %v2178_v37, %v2178_v37  ;;  %v328_v39 = vpop.f32.mrb[5].mxu1 }
  0xfe   :  { %2187 = vmatpush3.bf16.msra.mxu1 %v1249_v31  ;;  %v2097_v40 = vpack.c.bf16 %v328_v39, %v328_v39  ;;  %v2179_v41 = vpop.f32.mrb[6].mxu1 }
  0xff   :  { %2198 = vmatprep.subr.bf16.mxu1 %v2386_v0  ;;  %v2515_v42 = vsel %vm1201_vm2, %v2099_v38, 0  ;;  %v2100_v43 = vpack.c.bf16 %v2179_v41, %v2179_v41  ;;  %v331_v44 = vpop.f32.mrb[7].mxu1 }
 0x100   :  { %v2518_v45 = vsel %vm1201_vm2, %v2097_v40, 0  ;;  %v2098_v46 = vpack.c.bf16 %v331_v44, %v331_v44 }
 0x101   :  { %v2521_v47 = vsel %vm1201_vm2, %v2100_v43, 0 }
 0x102   :  { %v2524_v48 = vsel %vm1201_vm2, %v2098_v46, 0 }
 0x166   :  { %v346_v56 = vpop.permute.xlu0 %345  ;;  %v350_v59 = vpop.permute.xlu1 %349 }
 0x167   :  { %v356_v57 = vshrl.u32 %v346_v56, 16  ;;  %v353_v61 = vpack.i.b16 %v346_v56, %v343_v17  ;;  %v364_v5 = vshrl.u32 %v350_v59, 16 }
 0x169   :  { %v357_v63 = vpack.i.b16 %v356_v57, %v355_v58  ;;  %v380_v7 = vrot.slane %v353_v61, %v2526_v60  ;;  %v373_v13 = vcombine.high %v353_v61, %v2530_v3 }
 0x16a   :  { %v348_v1 = vpop.permute.xlu0 %347 }
 0x16b   :  { %v361_v4 = vpack.i.b16 %v350_v59, %v348_v1  ;;  %v363_v6 = vshrl.u32 %v348_v1, 16  ;;  %v439_v11 = vcombine.high %v357_v63, %v2530_v3  ;;  %v446_v16 = vrot.slane %v357_v63, %v2526_v60 }
 0x16c   :  { %v387_v27 = vrot.slane %v373_v13, %v2526_v60 }
 0x16d   :  { %v388_v9 = vcombine.high %v361_v4, %v2530_v3  ;;  %v395_v10 = vrot.slane %v361_v4, %v2526_v60  ;;  %v365_v12 = vpack.i.b16 %v364_v5, %v363_v6  ;;  %v453_v22 = vrot.slane %v439_v11, %v2526_v60 }
 0x16f   :  { %v403_v14 = vcombine.low %v380_v7, %v395_v10  ;;  %v404_v15 = vcombine.high %v380_v7, %v395_v10  ;;  %v454_v17 = vcombine.high %v365_v12, %v2530_v3  ;;  %v461_v18 = vrot.slane %v365_v12, %v2526_v60 }
 0x170   :  { %v402_v19 = vrot.slane %v388_v9, %v2526_v60 }
 0x171   :  { %v411_v20 = vrot.slane %v403_v14, %v2533_v8  ;;  %v418_v21 = vrot.slane %v404_v15, %v2533_v8  ;;  %v468_v23 = vrot.slane %v454_v17, %v2526_v60  ;;  %v469_v24 = vcombine.low %v446_v16, %v461_v18 }
 0x172   :  { %v470_v25 = vcombine.high %v446_v16, %v461_v18  ;;  %v419_v37 = vcombine.low %v387_v27, %v402_v19  ;;  %v420_v38 = vcombine.high %v387_v27, %v402_v19 }
 0x173   :  { %v505_v28 = vcombine.low %v411_v20, %v418_v21  ;;  %v2057_v30 = vcombine.high %v411_v20, %v418_v21  ;;  %v477_v31 = vrot.slane %v469_v24, %v2533_v8  ;;  %v485_v33 = vcombine.low %v453_v22, %v468_v23 }
 0x174   :  { %v484_v32 = vrot.slane %v470_v25, %v2533_v8  ;;  %v486_v35 = vcombine.high %v453_v22, %v468_v23  ;;  %v427_v52 = vrot.slane %v419_v37, %v2533_v8  ;;  %v434_v53 = vrot.slane %v420_v38, %v2533_v8 }
 0x175   :  { %v512_v39 = vrot.slane %v505_v28, %v2526_v60  ;;  %v520_v40 = vrot.slane %v2057_v30, %v2526_v60  ;;  %v493_v46 = vrot.slane %v485_v33, %v2533_v8 }
 0x176   :  { %v530_v41 = vcombine.low %v477_v31, %v484_v32  ;;  %v2058_v43 = vcombine.high %v477_v31, %v484_v32  ;;  %v500_v49 = vrot.slane %v486_v35, %v2533_v8  ;;  %v555_v59 = vcombine.low %v427_v52, %v434_v53 }
 0x177   :  { %v521_v44 = vcombine.low %v512_v39, %v520_v40  ;;  %v2059_v61 = vcombine.high %v427_v52, %v434_v53 }
 0x178   :  { %v537_v50 = vrot.slane %v530_v41, %v2526_v60  ;;  %v545_v51 = vrot.slane %v2058_v43, %v2526_v60  ;;  %v580_v56 = vcombine.low %v493_v46, %v500_v49  ;;  %v2060_v57 = vcombine.high %v493_v46, %v500_v49 }
 0x179   :  { %v528_v54 = vrot.slane %v521_v44, %v2533_v8  ;;  %v562_v9 = vrot.slane %v555_v59, %v2526_v60  ;;  %v570_v10 = vrot.slane %v2059_v61, %v2526_v60 }
 0x17a   :  { %v546_v55 = vcombine.low %v537_v50, %v545_v51  ;;  %v587_v4 = vrot.slane %v580_v56, %v2526_v60  ;;  %v595_v5 = vrot.slane %v2060_v57, %v2526_v60 }
 0x17b   :  { %v608_v63 = vshrl.u32 %v528_v54, 16  ;;  %v529_v11 = vcombine.high %v528_v54, %v2393_v2  ;;  %v571_v13 = vcombine.low %v562_v9, %v570_v10 }
 0x17c   :  { %v553_v58 = vrot.slane %v546_v55, %v2533_v8  ;;  %v596_v12 = vcombine.low %v587_v4, %v595_v5 }
 0x17d   :  { %v614_v15 = vshrl.u32 %v529_v11, 16 }
 0x17e   :  { %v607_v62 = vpack.i.b16 %v553_v58, %v528_v54  ;;  %v609_v1 = vshrl.u32 %v553_v58, 16  ;;  %v554_v7 = vcombine.high %v553_v58, %v2393_v2  ;;  %v603_v17 = vrot.slane %v596_v12, %v2533_v8 }
 0x180   :  { %2183 = vmatmul.mubr.msk.bf16.vlgmr.msra.gmra.mrb[8].mxu0 %vm1197_vm3, %v607_v62  ;;  %v610_v6 = vpack.i.b16 %v609_v1, %v608_v63  ;;  %v613_v14 = vpack.i.b16 %v554_v7, %v529_v11  ;;  %v621_v18 = vshrl.u32 %v603_v17, 16  ;;  %v604_v21 = vcombine.high %v603_v17, %v2393_v2 }
 0x181   :  { %2193 = vmatpush3.bf16.msra.mxu0 %v2501_v26  ;;  %2194 = vmatprep.mubr.msk.bf16.mxu0 %vm2387_vm0, %v2386_v0  ;;  %v615_v26 = vshrl.u32 %v554_v7, 16 }
 0x182   :  { %2189 = vmatmul.mubr.msk.bf16.vlgmr.msra.gmra.mrb[8].mxu1 %vm1197_vm3, %v610_v6  ;;  %2204 = vmatprep.subr.bf16.mxu0 %v2386_v0  ;;  %v627_v22 = vshrl.u32 %v604_v21, 16 }
 0x183   :  { %2199 = vmatpush3.bf16.msra.mxu1 %v2505_v29  ;;  %2200 = vmatprep.mubr.msk.bf16.mxu1 %vm2387_vm0, %v2386_v0  ;;  %v616_v16 = vpack.i.b16 %v615_v26, %v614_v15  ;;  %v578_v29 = vrot.slane %v571_v13, %v2533_v8 }
 0x184   :  { %2210 = vmatprep.subr.bf16.mxu1 %v2386_v0 }
 0x185   :  { %v619_v19 = vpack.i.b16 %v603_v17, %v578_v29  ;;  %v620_v20 = vshrl.u32 %v578_v29, 16 }
 0x188   :  { %2195 = vmatmul.mubr.msk.bf16.vlgmr.msra.gmra.mrb[12].mxu0 %vm1197_vm3, %v613_v14 }
 0x189   :  { %2205 = vmatpush3.bf16.msra.mxu0 %v2518_v45  ;;  %2206 = vmatprep.mubr.msk.bf16.mxu0 %vm2387_vm0, %v2386_v0  ;;  %v622_v45 = vpack.i.b16 %v621_v18, %v620_v20 }
 0x18a   :  { %2201 = vmatmul.mubr.msk.bf16.vlgmr.msra.gmra.mrb[12].mxu1 %vm1197_vm3, %v616_v16  ;;  %2216 = vmatprep.subr.bf16.mxu0 %v2386_v0 }
 0x18b   :  { %2211 = vmatpush3.bf16.msra.mxu1 %v2524_v48  ;;  %2212 = vmatprep.mubr.msk.bf16.mxu1 %vm2387_vm0, %v2386_v0  ;;  %v579_v48 = vcombine.high %v578_v29, %v2393_v2 }
 0x18c   :  { %2222 = vmatprep.subr.bf16.mxu1 %v2386_v0 }
 0x18d   :  { %v625_v23 = vpack.i.b16 %v604_v21, %v579_v48  ;;  %v626_v24 = vshrl.u32 %v579_v48, 16 }
 0x190   :  { %2207 = vmatmul.mubr.msk.bf16.vlgmr.msra.gmra.mrb[16].mxu0 %vm1197_vm3, %v619_v19 }
 0x191   :  { %2217 = vmatpush3.bf16.msra.mxu0 %v2515_v42  ;;  %2218 = vmatprep.mubr.msk.bf16.mxu0 %vm2387_vm0, %v2386_v0  ;;  %v628_v42 = vpack.i.b16 %v627_v22, %v626_v24 }
 0x192   :  { %2213 = vmatmul.mubr.msk.bf16.vlgmr.msra.gmra.mrb[16].mxu1 %vm1197_vm3, %v622_v45  ;;  %2228 = vmatprep.subr.bf16.mxu0 %v2386_v0 }
 0x193   :  { %2223 = vmatpush3.bf16.msra.mxu1 %v2521_v47  ;;  %2224 = vmatprep.mubr.msk.bf16.mxu1 %vm2387_vm0, %v2386_v0 }
 0x194   :  { %2234 = vmatprep.subr.bf16.mxu1 %v2386_v0 }
 0x198   :  { %2219 = vmatmul.mubr.msk.bf16.vlgmr.msra.gmra.mrb[20].mxu0 %vm1197_vm3, %v625_v23 }
 0x199   :  { %2230 = vmatprep.mubr.msk.bf16.mxu0 %vm2387_vm0, %v2386_v0 }
 0x19a   :  { %2225 = vmatmul.mubr.msk.bf16.vlgmr.msra.gmra.mrb[20].mxu1 %vm1197_vm3, %v628_v42 }
 0x19b   :  { %2236 = vmatprep.mubr.msk.bf16.mxu1 %vm2387_vm0, %v2386_v0 }
 0x253   :  { %v1239_v47 = vpop.f32.mrb[8].mxu0 }
 0x254   :  { %v2184_v2 = vpop.f32.mrb[9].mxu0  ;;  %v1568_v25 = vsel %vm1567_vm4, %v1239_v47, -inf }
 0x255   :  { %1569 = vmax.xlane.f32.xlu1 %v1568_v25  ;;  %v1242_v27 = vpop.f32.mrb[10].mxu0  ;;  %v1285_v28 = vpop.f32.mrb[8].mxu1 }
 0x256   :  { %v2185_v30 = vpop.f32.mrb[11].mxu0  ;;  %v2190_v31 = vpop.f32.mrb[9].mxu1  ;;  %v1571_v32 = vsel %vm1567_vm4, %v1285_v28, -inf }
 0x257   :  { %1572 = vmax.xlane.f32.xlu0 %v1571_v32  ;;  %v1288_v33 = vpop.f32.mrb[10].mxu1 }
 0x258   :  { %v2191_v35 = vpop.f32.mrb[11].mxu1 }
 0x25b   :  { %v1331_v37 = vpop.f32.mrb[12].mxu0 }
 0x25c   :  { %v2196_v38 = vpop.f32.mrb[13].mxu0  ;;  %v1574_v39 = vsel %vm1567_vm4, %v1331_v37, -inf }
 0x25d   :  { %v1334_v40 = vpop.f32.mrb[14].mxu0  ;;  %1575 = vmax.xlane.f32.xlu0 %v1574_v39  ;;  %v1377_v41 = vpop.f32.mrb[12].mxu1 }
 0x25e   :  { %v2197_v43 = vpop.f32.mrb[15].mxu0  ;;  %v2202_v44 = vpop.f32.mrb[13].mxu1  ;;  %v1577_v46 = vsel %vm1567_vm4, %v1377_v41, -inf  ;;  %v649_v40 = vshrl.u32 %v2512_v36, 16 }
 0x25f   :  { %1578 = vmax.xlane.f32.xlu1 %v1577_v46  ;;  %v1380_v49 = vpop.f32.mrb[14].mxu1 }
 0x260   :  { %v2203_v50 = vpop.f32.mrb[15].mxu1 }
 0x263   :  { %v2610_v51 = vpop.f32.mrb[16].mxu0 }
 0x264   :  { %v2208_v52 = vpop.f32.mrb[17].mxu0  ;;  %v1580_v53 = vsel %vm1567_vm4, %v2610_v51, -inf }
 0x265   :  { %v1426_v54 = vpop.f32.mrb[18].mxu0  ;;  %1581 = vmax.xlane.f32.xlu0 %v1580_v53  ;;  %v2614_v55 = vpop.f32.mrb[16].mxu1 }
 0x266   :  { %v2209_v56 = vpop.f32.mrb[19].mxu0  ;;  %v2214_v57 = vpop.f32.mrb[17].mxu1  ;;  %v1583_v58 = vsel %vm1567_vm4, %v2614_v55, -inf }
 0x267   :  { %1584 = vmax.xlane.f32.xlu1 %v1583_v58  ;;  %v1472_v59 = vpop.f32.mrb[18].mxu1 }
 0x268   :  { %v2215_v61 = vpop.f32.mrb[19].mxu1 }
 0x26b   :  { %v2618_v62 = vpop.f32.mrb[20].mxu0 }
 0x26c   :  { %v2220_v63 = vpop.f32.mrb[21].mxu0  ;;  %v1586_v1 = vsel %vm1567_vm4, %v2618_v62, -inf }
 0x26d   :  { %v1518_v4 = vpop.f32.mrb[22].mxu0  ;;  %1587 = vmax.xlane.f32.xlu0 %v1586_v1  ;;  %v2622_v5 = vpop.f32.mrb[20].mxu1 }
 0x26e   :  { %v2221_v6 = vpop.f32.mrb[23].mxu0  ;;  %v2226_v7 = vpop.f32.mrb[21].mxu1  ;;  %v1589_v11 = vsel %vm1567_vm4, %v2622_v5, -inf }
 0x26f   :  { %v1564_v9 = vpop.f32.mrb[22].mxu1 }
 0x270   :  { %v2227_v10 = vpop.f32.mrb[23].mxu1 }
 0x278   :  { %637 = vrot.lane.b32.xlu1 %v2512_v36, %s2390_s4 }
 0x27c   :  { %641 = vrot.lane.b32.xlu1 %v2512_v36, %s2388_s1 }
 0x283   :  { %633 = vrot.lane.b32.xlu0 %v2512_v36, %s2389_s2 }
 0x2a0   :  { %1590 = vmax.xlane.f32.xlu1 %v1589_v11 }
 0x2b1   :  { %635 = vrot.lane.b32.xlu1 %v2509_v34, %s2389_s2 }
 0x2e2   :  { %v1570_v12 = vpop.xlane.xlu1 %1569 }
 0x2e3   :  { %v1592_v26 = vsub.f32 %v1239_v47, %v1570_v12 }
 0x2e4   :  { %v1573_v13 = vpop.xlane.xlu0 %1572 }
 0x2e5   :  { %v1600_v14 = vmul.f32 1.442695, %v1592_v26  ;;  %v1593_v15 = vsub.f32 %v1285_v28, %v1573_v13 }
 0x2e7   :  { %2303 = vpow2.f32 %v1600_v14  ;;  %v1602_v16 = vmul.f32 1.442695, %v1593_v15 }
 0x2e9   :  { %2305 = vpow2.f32 %v1602_v16 }
 0x2ea   :  { %v1576_v17 = vpop.xlane.xlu0 %1575 }
 0x2eb   :  { %v1594_v29 = vsub.f32 %v1331_v37, %v1576_v17 }
 0x2ec   :  { %v1579_v18 = vpop.xlane.xlu1 %1578 }
 0x2ed   :  { %v1604_v19 = vmul.f32 1.442695, %v1594_v29  ;;  %v1595_v20 = vsub.f32 %v1377_v41, %v1579_v18 }
 0x2ef   :  { %2307 = vpow2.f32 %v1604_v19  ;;  %v1606_v45 = vmul.f32 1.442695, %v1595_v20 }
 0x2f1   :  { %v2634_v21 = vpop.eup %2303  ;;  %2309 = vpow2.f32 %v1606_v45 }
 0x2f2   :  { %v1616_v48 = vsel %vm1567_vm4, %v2634_v21, 0.0  ;;  %v2644_v42 = vpop.xlane.xlu0 %1581 }
 0x2f3   :  { %v2638_v22 = vpop.eup %2305  ;;  %1617 = vadd.xlane.f32.xlu0 %v1616_v48 }
 0x2f4   :  { %v2640_v23 = vpop.xlane.xlu1 %1584  ;;  %v1619_v24 = vsel %vm1567_vm4, %v2638_v22, 0.0 }
 0x2f5   :  { %1620 = vadd.xlane.f32.xlu1 %v1619_v24 }
 0x2f8   :  { %v638_v47 = vpop.permute.xlu1 %637 }
 0x2f9   :  { %v2646_v2 = vpop.eup %2307  ;;  %v657_v31 = vshrl.u32 %v638_v47, 16 }
 0x2fa   :  { %v2648_v25 = vpop.xlane.xlu0 %1587  ;;  %v1622_v27 = vsel %vm1567_vm4, %v2646_v2, 0.0 }
 0x2fb   :  { %v2652_v28 = vpop.eup %2309  ;;  %1623 = vadd.xlane.f32.xlu0 %v1622_v27 }
 0x2fc   :  { %v642_v30 = vpop.permute.xlu1 %641  ;;  %v1625_v37 = vsel %vm1567_vm4, %v2652_v28, 0.0 }
 0x2fd   :  { %v655_v32 = vpack.i.b16 %v642_v30, %v638_v47  ;;  %v658_v33 = vshrl.u32 %v642_v30, 16 }
 0x2fe   :  { %v634_v35 = vpop.permute.xlu0 %633 }
 0x2ff   :  { %v659_v38 = vpack.i.b16 %v658_v33, %v657_v31  ;;  %v692_v39 = vcombine.high %v655_v32, %v2530_v3  ;;  %1626 = vadd.xlane.f32.xlu0 %v1625_v37  ;;  %v647_v41 = vpack.i.b16 %v634_v35, %v2512_v36  ;;  %v650_v43 = vshrl.u32 %v634_v35, 16 }
 0x300   :  { %v699_v44 = vrot.slane %v655_v32, %v2526_v60 }
 0x301   :  { %v651_v46 = vpack.i.b16 %v650_v43, %v649_v40  ;;  %v677_v49 = vcombine.high %v647_v41, %v2530_v3  ;;  %v684_v50 = vrot.slane %v647_v41, %v2526_v60  ;;  %v706_v52 = vrot.slane %v692_v39, %v2526_v60 }
 0x302   :  { %v758_v53 = vcombine.high %v659_v38, %v2530_v3  ;;  %v765_v36 = vrot.slane %v659_v38, %v2526_v60 }
 0x303   :  { %v691_v54 = vrot.slane %v677_v49, %v2526_v60  ;;  %v707_v56 = vcombine.low %v684_v50, %v699_v44  ;;  %v708_v57 = vcombine.high %v684_v50, %v699_v44  ;;  %v743_v58 = vcombine.high %v651_v46, %v2530_v3 }
 0x304   :  { %v750_v59 = vrot.slane %v651_v46, %v2526_v60  ;;  %v772_v6 = vrot.slane %v758_v53, %v2526_v60 }
 0x305   :  { %v715_v61 = vrot.slane %v707_v56, %v2533_v8  ;;  %v722_v63 = vrot.slane %v708_v57, %v2533_v8  ;;  %v723_v1 = vcombine.low %v691_v54, %v706_v52  ;;  %v724_v4 = vcombine.high %v691_v54, %v706_v52 }
 0x306   :  { %643 = vrot.lane.b32.xlu1 %v2509_v34, %s2388_s1  ;;  %v757_v7 = vrot.slane %v743_v58, %v2526_v60  ;;  %v773_v9 = vcombine.low %v750_v59, %v765_v36  ;;  %v774_v10 = vcombine.high %v750_v59, %v765_v36  ;;  %v1596_v54 = vsub.f32 %v2610_v51, %v2644_v42 }
 0x307   :  { %v731_v11 = vrot.slane %v723_v1, %v2533_v8  ;;  %v738_v12 = vrot.slane %v724_v4, %v2533_v8  ;;  %v941_v26 = vcombine.low %v715_v61, %v722_v63  ;;  %v2061_v13 = vcombine.high %v715_v61, %v722_v63 }
 0x308   :  { %v781_v14 = vrot.slane %v773_v9, %v2533_v8  ;;  %v788_v15 = vrot.slane %v774_v10, %v2533_v8  ;;  %v789_v16 = vcombine.low %v757_v7, %v772_v6  ;;  %v790_v17 = vcombine.high %v757_v7, %v772_v6 }
 0x309   :  { %v948_v29 = vrot.slane %v941_v26, %v2526_v60  ;;  %v956_v18 = vrot.slane %v2061_v13, %v2526_v60  ;;  %v957_v19 = vcombine.low %v731_v11, %v738_v12  ;;  %v2062_v20 = vcombine.high %v731_v11, %v738_v12 }
 0x30a   :  { %v797_v45 = vrot.slane %v789_v16, %v2533_v8  ;;  %v804_v48 = vrot.slane %v790_v17, %v2533_v8  ;;  %v991_v24 = vcombine.low %v781_v14, %v788_v15  ;;  %v2063_v47 = vcombine.high %v781_v14, %v788_v15 }
 0x30b   :  { %v964_v27 = vrot.slane %v957_v19, %v2526_v60  ;;  %v972_v30 = vrot.slane %v2062_v20, %v2526_v60  ;;  %v973_v31 = vcombine.low %v948_v29, %v956_v18  ;;  %v1608_v4 = vmul.f32 1.442695, %v1596_v54 }
 0x30c   :  { %v998_v32 = vrot.slane %v991_v24, %v2526_v60  ;;  %v1006_v33 = vrot.slane %v2063_v47, %v2526_v60  ;;  %v1007_v35 = vcombine.low %v797_v45, %v804_v48  ;;  %v2064_v37 = vcombine.high %v797_v45, %v804_v48 }
 0x30d   :  { %v981_v38 = vcombine.low %v964_v27, %v972_v30  ;;  %v980_v43 = vrot.slane %v973_v31, %v2533_v8  ;;  %2311 = vpow2.f32 %v1608_v4  ;;  %v1597_v42 = vsub.f32 %v2614_v55, %v2640_v23 }
 0x30e   :  { %v1014_v39 = vrot.slane %v1007_v35, %v2526_v60  ;;  %v1022_v40 = vrot.slane %v2064_v37, %v2526_v60  ;;  %v1023_v41 = vcombine.low %v998_v32, %v1006_v33  ;;  %v1598_v9 = vsub.f32 %v2618_v62, %v2648_v25 }
 0x30f   :  { %v988_v44 = vrot.slane %v981_v38, %v2533_v8  ;;  %v1610_v7 = vmul.f32 1.442695, %v1597_v42  ;;  %v665_v45 = vshrl.u32 %v2509_v34, 16 }
 0x310   :  { %v1031_v46 = vcombine.low %v1014_v39, %v1022_v40  ;;  %v1030_v52 = vrot.slane %v1023_v41, %v2533_v8  ;;  %v1612_v11 = vmul.f32 1.442695, %v1598_v9 }
 0x311   :  { %v989_v49 = vcombine.low %v980_v43, %v988_v44  ;;  %v2690_v50 = vcombine.high %v980_v43, %v988_v44  ;;  %2313 = vpow2.f32 %v1610_v7 }
 0x312   :  { %v1038_v53 = vrot.slane %v1031_v46, %v2533_v8  ;;  %2315 = vpow2.f32 %v1612_v11 }
 0x313   :  { %v1145_v58 = vshrl.u32 %v989_v49, 16  ;;  %v1153_v36 = vshrl.u32 %v2690_v50, 16 }
 0x314   :  { %v1039_v56 = vcombine.low %v1030_v52, %v1038_v53  ;;  %v2698_v57 = vcombine.high %v1030_v52, %v1038_v53 }
 0x315   :  { %639 = vrot.lane.b32.xlu0 %v2509_v34, %s2390_s4 }
 0x316   :  { %v1143_v59 = vpack.i.b16 %v1039_v56, %v989_v49  ;;  %v1146_v61 = vshrl.u32 %v1039_v56, 16  ;;  %v1151_v63 = vpack.i.b16 %v2698_v57, %v2690_v50  ;;  %v1154_v1 = vshrl.u32 %v2698_v57, 16 }
 0x317   :  { %v2712_v10 = vpop.eup %2311 }
 0x318   :  { %2229 = vmatpush3.bf16.msra.mxu0 %v1143_v59  ;;  %v1147_v6 = vpack.i.b16 %v1146_v61, %v1145_v58  ;;  %v2704_v51 = vpack.i.b16 %v1154_v1, %v1153_v36  ;;  %v1628_v12 = vsel %vm1567_vm4, %v2712_v10, 0.0 }
 0x319   :  { %2240 = vmatprep.subr.bf16.mxu0 %v2386_v0 }
 0x31a   :  { %2235 = vmatpush3.bf16.msra.mxu1 %v1147_v6 }
 0x31b   :  { %2246 = vmatprep.subr.bf16.mxu1 %v2386_v0  ;;  %v2717_v14 = vpop.eup %2313 }
 0x31c   :  { %v1631_v55 = vsel %vm1567_vm4, %v2717_v14, 0.0  ;;  %v2721_v62 = vpop.eup %2315 }
 0x31d   :  { %v1634_v23 = vsel %vm1567_vm4, %v2721_v62, 0.0 }
 0x32a   :  { %1629 = vadd.xlane.f32.xlu1 %v1628_v12 }
 0x32d   :  { %v1591_v26 = vpop.xlane.xlu1 %1590 }
 0x32e   :  { %v1599_v13 = vsub.f32 %v2622_v5, %v1591_v26 }
 0x330   :  { %v1614_v15 = vmul.f32 1.442695, %v1599_v13 }
 0x331   :  { %v636_v5 = vpop.permute.xlu1 %635 }
 0x332   :  { %2317 = vpow2.f32 %v1614_v15  ;;  %v666_v19 = vshrl.u32 %v636_v5, 16  ;;  %v663_v48 = vpack.i.b16 %v636_v5, %v2509_v34 }
 0x334   :  { %1632 = vadd.xlane.f32.xlu0 %v1631_v55  ;;  %v667_v30 = vpack.i.b16 %v666_v19, %v665_v45  ;;  %v809_v35 = vcombine.high %v663_v48, %v2530_v3  ;;  %v816_v34 = vrot.slane %v663_v48, %v2526_v60 }
 0x336   :  { %v823_v49 = vrot.slane %v809_v35, %v2526_v60  ;;  %v882_v57 = vrot.slane %v667_v30, %v2526_v60 }
 0x338   :  { %1635 = vadd.xlane.f32.xlu0 %v1634_v23 }
 0x33c   :  { %v2725_v25 = vpop.eup %2317 }
 0x33d   :  { %v1637_v16 = vsel %vm1567_vm4, %v2725_v25, 0.0 }
 0x33e   :  { %1638 = vadd.xlane.f32.xlu1 %v1637_v16 }
 0x380   :  { %v1618_v17 = vpop.xlane.xlu0 %1617 }
 0x381   :  { %2319 = vrcp.f32 %v1618_v17 }
 0x382   :  { %v1621_v29 = vpop.xlane.xlu1 %1620 }
 0x383   :  { %2321 = vrcp.f32 %v1621_v29 }
 0x386   :  { %v644_v32 = vpop.permute.xlu1 %643 }
 0x387   :  { %v674_v39 = vshrl.u32 %v644_v32, 16 }
 0x388   :  { %v1624_v18 = vpop.xlane.xlu0 %1623 }
 0x389   :  { %2323 = vrcp.f32 %v1624_v18 }
 0x38b   :  { %v2320_v20 = vpop.eup %2319 }
 0x38c   :  { %v1648_v24 = vmul.f32 %v2320_v20, %v2634_v21  ;;  %v1627_v47 = vpop.xlane.xlu0 %1626  ;;  %v875_v21 = vcombine.high %v667_v30, %v2530_v3 }
 0x38d   :  { %v2322_v27 = vpop.eup %2321  ;;  %2325 = vrcp.f32 %v1627_v47 }
 0x38e   :  { %v1649_v31 = vmul.f32 %v2322_v27, %v2638_v22  ;;  %v1656_v33 = vpack.c.bf16 %v1648_v24, %v1648_v24  ;;  %v889_v58 = vrot.slane %v875_v21, %v2526_v60 }
 0x390   :  { %v640_v37 = vpop.permute.xlu0 %639  ;;  %2231 = vmatmul.mubr.msk.bf16.vlgmr.msra.gmra.mrb[24].mxu0 %vm1567_vm4, %v1656_v33  ;;  %v1657_v38 = vpack.c.bf16 %v1649_v31, %v1649_v31 }
 0x391   :  { %v671_v40 = vpack.i.b16 %v644_v32, %v640_v37  ;;  %v673_v41 = vshrl.u32 %v640_v37, 16  ;;  %2241 = vmatpush3.bf16.msra.mxu0 %v1151_v63  ;;  %2242 = vmatprep.mubr.msk.bf16.mxu0 %vm2387_vm0, %v2386_v0 }
 0x392   :  { %2237 = vmatmul.mubr.msk.bf16.vlgmr.msra.gmra.mrb[24].mxu1 %vm1567_vm4, %v1657_v38  ;;  %2252 = vmatprep.subr.bf16.mxu0 %v2386_v0 }
 0x393   :  { %v2324_v22 = vpop.eup %2323  ;;  %v675_v43 = vpack.i.b16 %v674_v39, %v673_v41  ;;  %v824_v44 = vcombine.high %v671_v40, %v2530_v3  ;;  %v831_v46 = vrot.slane %v671_v40, %v2526_v60  ;;  %2247 = vmatpush3.bf16.msra.mxu1 %v2704_v51  ;;  %2248 = vmatprep.mubr.msk.bf16.mxu1 %vm2387_vm0, %v2386_v0 }
 0x394   :  { %v1650_v50 = vmul.f32 %v2324_v22, %v2646_v2  ;;  %2258 = vmatprep.subr.bf16.mxu1 %v2386_v0 }
 0x395   :  { %v838_v52 = vrot.slane %v824_v44, %v2526_v60  ;;  %v839_v53 = vcombine.low %v816_v34, %v831_v46  ;;  %v840_v54 = vcombine.high %v816_v34, %v831_v46  ;;  %v890_v56 = vcombine.high %v675_v43, %v2530_v3 }
 0x396   :  { %v897_v36 = vrot.slane %v675_v43, %v2526_v60  ;;  %v1658_v59 = vpack.c.bf16 %v1650_v50, %v1650_v50 }
 0x397   :  { %v2326_v61 = vpop.eup %2325  ;;  %v847_v63 = vrot.slane %v839_v53, %v2533_v8  ;;  %v854_v2 = vrot.slane %v840_v54, %v2533_v8  ;;  %v855_v1 = vcombine.low %v823_v49, %v838_v52  ;;  %v856_v4 = vcombine.high %v823_v49, %v838_v52 }
 0x398   :  { %v1651_v6 = vmul.f32 %v2326_v61, %v2652_v28  ;;  %v904_v51 = vrot.slane %v890_v56, %v2526_v60  ;;  %v905_v42 = vcombine.low %v882_v57, %v897_v36  ;;  %v906_v3 = vcombine.high %v882_v57, %v897_v36  ;;  %2243 = vmatmul.mubr.msk.bf16.vlgmr.msra.gmra.mrb[28].mxu0 %vm1567_vm4, %v1658_v59 }
 0x399   :  { %v863_v7 = vrot.slane %v855_v1, %v2533_v8  ;;  %v870_v9 = vrot.slane %v856_v4, %v2533_v8  ;;  %v1041_v11 = vcombine.low %v847_v63, %v854_v2  ;;  %v2065_v12 = vcombine.high %v847_v63, %v854_v2  ;;  %2254 = vmatprep.mubr.msk.bf16.mxu0 %vm2387_vm0, %v2386_v0 }
 0x39a   :  { %v913_v26 = vrot.slane %v905_v42, %v2533_v8  ;;  %v920_v13 = vrot.slane %v906_v3, %v2533_v8  ;;  %v921_v28 = vcombine.low %v889_v58, %v904_v51  ;;  %v922_v15 = vcombine.high %v889_v58, %v904_v51 }
 0x39b   :  { %v1048_v55 = vrot.slane %v1041_v11, %v2526_v60  ;;  %v1056_v23 = vrot.slane %v2065_v12, %v2526_v60  ;;  %v1057_v16 = vcombine.low %v863_v7, %v870_v9  ;;  %v2066_v5 = vcombine.high %v863_v7, %v870_v9 }
 0x39c   :  { %v929_v17 = vrot.slane %v921_v28, %v2533_v8  ;;  %v936_v29 = vrot.slane %v922_v15, %v2533_v8  ;;  %v1091_v18 = vcombine.low %v913_v26, %v920_v13  ;;  %v2067_v19 = vcombine.high %v913_v26, %v920_v13 }
 0x39d   :  { %v1064_v20 = vrot.slane %v1057_v16, %v2526_v60  ;;  %v1072_v45 = vrot.slane %v2066_v5, %v2526_v60  ;;  %v1659_v48 = vpack.c.bf16 %v1651_v6, %v1651_v6  ;;  %v1073_v24 = vcombine.low %v1048_v55, %v1056_v23 }
 0x39e   :  { %v1098_v47 = vrot.slane %v1091_v18, %v2526_v60  ;;  %v1106_v27 = vrot.slane %v2067_v19, %v2526_v60  ;;  %v1107_v30 = vcombine.low %v929_v17, %v936_v29  ;;  %v2068_v31 = vcombine.high %v929_v17, %v936_v29 }
 0x39f   :  { %2249 = vmatmul.mubr.msk.bf16.vlgmr.msra.gmra.mrb[28].mxu1 %vm1567_vm4, %v1659_v48  ;;  %v1081_v32 = vcombine.low %v1064_v20, %v1072_v45  ;;  %v1080_v39 = vrot.slane %v1073_v24, %v2533_v8 }
 0x3a0   :  { %v1114_v33 = vrot.slane %v1107_v30, %v2526_v60  ;;  %v1122_v35 = vrot.slane %v2068_v31, %v2526_v60  ;;  %v1123_v37 = vcombine.low %v1098_v47, %v1106_v27  ;;  %2260 = vmatprep.mubr.msk.bf16.mxu1 %vm2387_vm0, %v2386_v0 }
 0x3a1   :  { %v1088_v38 = vrot.slane %v1081_v32, %v2533_v8 }
 0x3a2   :  { %v1131_v40 = vcombine.low %v1114_v33, %v1122_v35  ;;  %v1130_v34 = vrot.slane %v1123_v37, %v2533_v8 }
 0x3a3   :  { %v1089_v41 = vcombine.low %v1080_v39, %v1088_v38 }
 0x3a4   :  { %v1138_v21 = vrot.slane %v1131_v40, %v2533_v8  ;;  %v1090_v8 = vcombine.high %v1080_v39, %v1088_v38 }
 0x3a5   :  { %v1161_v44 = vshrl.u32 %v1089_v41, 16 }
 0x3a6   :  { %v1139_v22 = vcombine.low %v1130_v34, %v1138_v21  ;;  %v1140_v53 = vcombine.high %v1130_v34, %v1138_v21  ;;  %v1169_v2 = vshrl.u32 %v1090_v8, 16 }
 0x3a8   :  { %v1159_v43 = vpack.i.b16 %v1139_v22, %v1089_v41  ;;  %v1162_v46 = vshrl.u32 %v1139_v22, 16  ;;  %v1167_v58 = vpack.i.b16 %v1140_v53, %v1090_v8  ;;  %v1170_v61 = vshrl.u32 %v1140_v53, 16 }
 0x3aa   :  { %2253 = vmatpush3.bf16.msra.mxu0 %v1159_v43  ;;  %v1163_v60 = vpack.i.b16 %v1162_v46, %v1161_v44  ;;  %v1171_v4 = vpack.i.b16 %v1170_v61, %v1169_v2 }
 0x3ab   :  { %2264 = vmatprep.subr.bf16.mxu0 %v2386_v0 }
 0x3ac   :  { %2259 = vmatpush3.bf16.msra.mxu1 %v1163_v60 }
 0x3ad   :  { %2270 = vmatprep.subr.bf16.mxu1 %v2386_v0 }
 0x3b7   :  { %v1630_v49 = vpop.xlane.xlu1 %1629 }
 0x3b8   :  { %2327 = vrcp.f32 %v1630_v49 }
 0x3c1   :  { %v1633_v50 = vpop.xlane.xlu0 %1632 }
 0x3c2   :  { %v2328_v52 = vpop.eup %2327  ;;  %2329 = vrcp.f32 %v1633_v50 }
 0x3c3   :  { %v1652_v54 = vmul.f32 %v2328_v52, %v2712_v10 }
 0x3c5   :  { %v1636_v56 = vpop.xlane.xlu0 %1635  ;;  %v1660_v57 = vpack.c.bf16 %v1652_v54, %v1652_v54 }
 0x3c6   :  { %2331 = vrcp.f32 %v1636_v56 }
 0x3c7   :  { %2255 = vmatmul.mubr.msk.bf16.vlgmr.msra.gmra.mrb[32].mxu0 %vm1567_vm4, %v1660_v57 }
 0x3c8   :  { %2265 = vmatpush3.bf16.msra.mxu0 %v1167_v58  ;;  %2266 = vmatprep.mubr.msk.bf16.mxu0 %vm2387_vm0, %v2386_v0 }
 0x3cb   :  { %v1639_v36 = vpop.xlane.xlu1 %1638 }
 0x3cc   :  { %v2330_v59 = vpop.eup %2329  ;;  %2333 = vrcp.f32 %v1639_v36 }
 0x3cd   :  { %v1653_v63 = vmul.f32 %v2330_v59, %v2717_v14 }
 0x3cf   :  { %v1661_v1 = vpack.c.bf16 %v1653_v63, %v1653_v63 }
 0x3d0   :  { %v2332_v10 = vpop.eup %2331 }
 0x3d1   :  { %v1654_v6 = vmul.f32 %v2332_v10, %v2721_v62  ;;  %2261 = vmatmul.mubr.msk.bf16.vlgmr.msra.gmra.mrb[32].mxu1 %vm1567_vm4, %v1661_v1 }
 0x3d2   :  { %2271 = vmatpush3.bf16.msra.mxu1 %v1171_v4  ;;  %2272 = vmatprep.mubr.msk.bf16.mxu1 %vm2387_vm0, %v2386_v0 }
 0x3d3   :  { %v1662_v51 = vpack.c.bf16 %v1654_v6, %v1654_v6 }
 0x3d5   :  { %2267 = vmatmul.mubr.msk.bf16.vlgmr.msra.gmra.mrb[36].mxu0 %vm1567_vm4, %v1662_v51 }
 0x3d6   :  { %v2334_v42 = vpop.eup %2333 }
 0x3d7   :  { %v1655_v3 = vmul.f32 %v2334_v42, %v2725_v25 }
 0x3d9   :  { %v1663_v7 = vpack.c.bf16 %v1655_v3, %v1655_v3 }
 0x3db   :  { %2273 = vmatmul.mubr.msk.bf16.vlgmr.msra.gmra.mrb[36].mxu1 %vm1567_vm4, %v1663_v7 }
 0x463   :  { %v1701_v14 = vpop.f32.mrb[24].mxu0 }
 0x464   :  { %2008 = vst.msk [vmem:[#allocation5] sm:$0xff] %vm1197_vm3, %v1701_v14  ;;  %v2232_v9 = vpop.f32.mrb[25].mxu0 }
 0x465   :  { %v1704_v62 = vpop.f32.mrb[26].mxu0  ;;  %v1744_v11 = vpop.f32.mrb[24].mxu1 }
 0x466   :  { %2009 = vst.msk [vmem:[#allocation5 + $0x8] sm:$0xff] %vm1197_vm3, %v1744_v11  ;;  %v2233_v12 = vpop.f32.mrb[27].mxu0  ;;  %v2238_v26 = vpop.f32.mrb[25].mxu1 }
 0x467   :  { %v1747_v0 = vpop.f32.mrb[26].mxu1 }
 0x468   :  { %v2239_v13 = vpop.f32.mrb[27].mxu1 }
 0x46b   :  { %v1787_v28 = vpop.f32.mrb[28].mxu0 }
 0x46c   :  { %2010 = vst.msk [vmem:[#allocation5 + $0x10] sm:$0xff] %vm1197_vm3, %v1787_v28  ;;  %v2244_v15 = vpop.f32.mrb[29].mxu0 }
 0x46d   :  { %v1790_v25 = vpop.f32.mrb[30].mxu0 }
 0x46e   :  { %v2245_v55 = vpop.f32.mrb[31].mxu0 }
 0x472   :  { %v1830_v23 = vpop.f32.mrb[28].mxu1 }
 0x473   :  { %2011 = vst.msk [vmem:[#allocation5 + $0x18] sm:$0xff] %vm1197_vm3, %v1830_v23  ;;  %v2250_v16 = vpop.f32.mrb[29].mxu1 }
 0x474   :  { %v1833_v5 = vpop.f32.mrb[30].mxu1 }
 0x475   :  { %v2251_v17 = vpop.f32.mrb[31].mxu1 }
 0x49a   :  { %v1873_v29 = vpop.f32.mrb[32].mxu0 }
 0x49b   :  { %2012 = vst.msk [vmem:[#allocation5 + $0x20] sm:$0xff] %vm1197_vm3, %v1873_v29  ;;  %v2256_v18 = vpop.f32.mrb[33].mxu0 }
 0x49c   :  { %v1876_v19 = vpop.f32.mrb[34].mxu0 }
 0x49d   :  { %v2257_v20 = vpop.f32.mrb[35].mxu0 }
 0x4a4   :  { %v1916_v45 = vpop.f32.mrb[32].mxu1 }
 0x4a5   :  { %2013 = vst.msk [vmem:[#allocation5 + $0x28] sm:$0xff] %vm1197_vm3, %v1916_v45  ;;  %v2262_v48 = vpop.f32.mrb[33].mxu1 }
 0x4a6   :  { %v1919_v24 = vpop.f32.mrb[34].mxu1 }
 0x4a7   :  { %v2263_v47 = vpop.f32.mrb[35].mxu1 }
 0x4a8   :  { %v1959_v27 = vpop.f32.mrb[36].mxu0 }
 0x4a9   :  { %2014 = vst.msk [vmem:[#allocation5 + $0x30] sm:$0xff] %vm1197_vm3, %v1959_v27  ;;  %v2268_v30 = vpop.f32.mrb[37].mxu0 }
 0x4aa   :  { %v1962_v31 = vpop.f32.mrb[38].mxu0 }
 0x4ab   :  { %v2269_v32 = vpop.f32.mrb[39].mxu0 }
 0x4ae   :  { %v2002_v33 = vpop.f32.mrb[36].mxu1 }
 0x4af   :  { %2015 = vst.msk [vmem:[#allocation5 + $0x38] sm:$0xff] %vm1197_vm3, %v2002_v33  ;;  %v2274_v35 = vpop.f32.mrb[37].mxu1 }
 0x4b0   :  { %v2005_v37 = vpop.f32.mrb[38].mxu1 }
 0x4b1   :  { %2368 = shalt.err (!%p2365_p12)
}
 0x4b2   :  { %s2369_s13 = scalar_lea.hbm %s2822_s6, 1024 }
 0x4b3   :  { %p2370_p13 = scmp.ne.s32.totalorder %s2822_s6, %s2369_s13  ;;  %p2373_p0 = scmp.lt.u32.totalorder %s2369_s13, %s2822_s6 }
 0x4b5   :  { %p2375_p1 = pnand %p2373_p0, %p2370_p13 }
 0x4b7   :  { %2378 = shalt.err (!%p2375_p1)
}
 0x4b8   :  { %s2395_s17 = smov 128   ;;  %s2396_s18 = smov 8   ;;  %v2275_v38 = vpop.f32.mrb[39].mxu1 }
 0x4b9   :  { %2027 = dma.vmem_to_hbm [thread:$0]  %s2022_s9, 1024, %s2822_s6, [#allocation4], %s2395_s17, %s2395_s17, %s2396_s18  }
 0x4ba   :  { %2381 = dma.done.wait [#allocation4], 1024  }
 0x4bb   :  { %2382 = vsyncadd [#allocation4], 4294966272 }
 0x4bc   :  { %2031 = vsyncpa [#allocation3], 1 }
 0x4bd   :  { %2032 = vsyncpa [#allocation4], 1 }

</bundles_post_ra>
